<compile_context>
chip_gen: v6e
topology: v6e:2x2x1
jax: 0.10.0
libtpu: 0.0.40
codegen_flags: <defaults>
</compile_context>

<pallas_src>
import jax
import jax.numpy as jnp
from jax import lax
from jax.experimental import pallas as pl
from jax.experimental.pallas import tpu as pltpu

# --- TCNBlock hyper-parameters (module defaults) ---
F2 = 16          # input channels
FT = 12          # TCN channels
KT = 4           # causal conv kernel size
CP = 16          # channel padding used inside the kernel (multiple of 8)
BN_EPS = 1e-5

assert F2 == CP, "kernel assumes F2 == CP"


def _elu(x):
    # PyTorch nn.ELU(alpha=1.0); clamp the exp argument to avoid useless
    # overflow work on the positive (discarded) branch.
    return jnp.where(x > 0.0, x, jnp.exp(jnp.minimum(x, 0.0)) - 1.0)


# ----------------------------------------------------------------------------
# Kernel
# ----------------------------------------------------------------------------
def tcn_block_kernel(x_ref, wp_ref, vp_ref, wres_ref, out_ref):
    """TB batch elements per grid step, lane-concatenated to (CP, TB*Lp).

    x_ref:    (TB, CP, Lp)     input, channels on sublanes, time on lanes
    wp_ref:   (8, CP, KT*CP)   fused causal-conv weights, bfloat16
    vp_ref:   (11, CP, 1)      biases / BN scale / BN shift / residual bias (f32)
    wres_ref: (CP, F2)         residual 1x1 conv weight, bfloat16
    out_ref:  (TB, CP, Lp)     full 16-row tile; rows FT..CP are zero
    """
    TB, _, Lp = x_ref.shape
    TBL = TB * Lp

    # Lane-concatenate the TB batch elements: (CP, TB*Lp), time-major lanes.
    x = jnp.concatenate([x_ref[t] for t in range(TB)], axis=1).astype(jnp.float32)

    # Per-segment local time index (hoisted once, reused by every mask).
    t_iota = lax.broadcasted_iota(jnp.int32, (CP, TBL), 1)
    t_local = t_iota if TB == 1 else t_iota % Lp

    masks = {}  # one cached (CP, TBL) mask per distinct shift value

    def shift(h, s):
        # Causal time shift per batch segment: out[:, t] = h[:, t - s], zero
        # for local t < s.  The roll wraps across segment boundaries only
        # into positions that the mask zeroes out.
        if s == 0:
            return h
        if s not in masks:
            masks[s] = t_local < s
        return jnp.where(masks[s], 0.0, pltpu.roll(h, shift=s, axis=1))

    def conv(h, w_idx, bias_idx, dilation):
        # Fused K-tap dilated causal conv: one (CP, KT*CP) @ (KT*CP, TB*Lp)
        # MXU matmul with bf16 operands, f32 accumulation.
        x_cat = jnp.concatenate(
            [shift(h, (KT - 1 - k) * dilation) for k in range(KT)], axis=0)
        out = jnp.dot(wp_ref[w_idx], x_cat.astype(jnp.bfloat16),
                      preferred_element_type=jnp.float32)
        if bias_idx is not None:
            out = out + vp_ref[bias_idx]
        return out

    # --- first dilated causal stack (conv-4 bias folded into BN shift) ---
    h = conv(x, 0, 0, 1)
    h = conv(h, 1, 1, 2)
    h = conv(h, 2, 2, 4)
    h = conv(h, 3, None, 8)
    h = _elu(h * vp_ref[6] + vp_ref[7])      # BatchNorm (inference) + ELU; Dropout = id

    # --- second dilated causal stack (conv-8 bias folded into BN shift) ---
    h = conv(h, 4, 3, 1)
    h = conv(h, 5, 4, 2)
    h = conv(h, 6, 5, 4)
    h = conv(h, 7, None, 8)
    h = _elu(h * vp_ref[8] + vp_ref[9])

    # --- residual 1x1 conv (F2 != FT branch of TCNBlock.forward) ---
    res = jnp.dot(wres_ref[...], x.astype(jnp.bfloat16),
                  preferred_element_type=jnp.float32) + vp_ref[10]

    y = (h + res).astype(out_ref.dtype)      # (CP, TB*Lp); rows FT..CP are zero
    for t in range(TB):                      # static, lane-aligned slices
        out_ref[t] = y[:, t * Lp:(t + 1) * Lp]


# ----------------------------------------------------------------------------
# Parameter packing (runs once in plain JAX, outside the kernel)
# ----------------------------------------------------------------------------
def pack_params(params):
    """Pack the 22 module parameters into 3 kernel arrays.

    Conv weights (K, Cin, Cout) [torch weight[co,ci,k] == w[k,ci,co]] are
    zero-padded to CP channels and fused to (CP, KT*CP) with column index
    k*CP + ci, matching the x_cat concat order in the kernel.  Matmul
    operands (wpack, wres) are stored in bfloat16; per-channel vectors stay
    f32.  Padded channels get zero weights / biases / BN scale & shift so
    they stay exactly zero through every conv, BN and ELU.
    """
    (w1, b1, w2, b2, w3, b3, w4, b4, bn1s, bn1t,
     w5, b5, w6, b6, w7, b7, w8, b8, bn2s, bn2t,
     wres, bres) = params

    def fuse_w(w):                               # (K, Cin, Cout) -> (CP, K*CP)
        k, cin, cout = w.shape
        wp = jnp.zeros((k, CP, CP), jnp.float32).at[:, :cin, :cout].set(w)
        return jnp.transpose(wp, (2, 0, 1)).reshape(CP, k * CP)

    def pad_vec(v):                              # (1, C) -> (CP, 1)
        c = v.shape[-1]
        return jnp.zeros((CP,), jnp.float32).at[:c].set(v.reshape(-1))[:, None]

    wpack = jnp.stack([fuse_w(w) for w in (w1, w2, w3, w4, w5, w6, w7, w8)])
    wpack = wpack.astype(jnp.bfloat16)

    # Fold the conv-4 / conv-8 biases into the (inference) BN shifts.
    bn1t_eff = bn1t + bn1s * b4
    bn2t_eff = bn2t + bn2s * b8

    vpack = jnp.stack([
        pad_vec(b1), pad_vec(b2), pad_vec(b3),          # 0..2
        pad_vec(b5), pad_vec(b6), pad_vec(b7),          # 3..5
        pad_vec(bn1s), pad_vec(bn1t_eff),               # 6, 7
        pad_vec(bn2s), pad_vec(bn2t_eff),               # 8, 9
        pad_vec(bres),                                  # 10
    ])                                                  # (11, CP, 1)  f32

    wres_p = jnp.zeros((CP, F2), jnp.float32).at[:FT, :].set(wres.T)
    return wpack, vpack, wres_p.astype(jnp.bfloat16)


# ----------------------------------------------------------------------------
# Wrapper
# ----------------------------------------------------------------------------
def _choose_tb(B, Lp, max_cols=512):
    """Largest TB dividing B with TB*Lp <= max_cols, keeping >= 2 grid steps
    whenever B >= 2 (so both v7x TensorCores get work)."""
    best = 1
    for tb in range(1, B + 1):
        if B % tb:
            continue
        if tb * Lp > max_cols:
            continue
        if B >= 2 and B // tb < 2:
            continue
        best = tb
    return best


def tcn_block(x_nchw, params):
    """x_nchw: (B, F2, 1, L) like the PyTorch module.  Returns (B, FT, 1, L)."""
    B, C, one, L = x_nchw.shape
    assert C == F2 and one == 1

    Lp = ((L + 127) // 128) * 128                        # lane-dense time axis
    x = x_nchw.reshape(B, F2, L).astype(jnp.float32)     # no transpose needed
    if Lp != L:
        x = jnp.pad(x, ((0, 0), (0, 0), (0, Lp - L)))    # causal => tail pad is inert

    TB = _choose_tb(B, Lp)
    grid_b = B // TB

    wpack, vpack, wres_p = pack_params(params)

    out = pl.pallas_call(
        tcn_block_kernel,
        out_shape=jax.ShapeDtypeStruct((B, CP, Lp), jnp.float32),
        grid_spec=pltpu.PrefetchScalarGridSpec(
            num_scalar_prefetch=0,
            grid=(grid_b,),
            in_specs=[
                pl.BlockSpec((TB, CP, Lp), lambda b: (b, 0, 0)),
                pl.BlockSpec(wpack.shape, lambda b: (0, 0, 0)),
                pl.BlockSpec(vpack.shape, lambda b: (0, 0, 0)),
                pl.BlockSpec(wres_p.shape, lambda b: (0, 0)),
            ],
            out_specs=pl.BlockSpec((TB, CP, Lp), lambda b: (b, 0, 0)),
        ),
        compiler_params=pltpu.CompilerParams(dimension_semantics=("parallel",)),
    )(x, wpack, vpack, wres_p)

    # Drop the zero channel-padding rows and the padded time tail.
    return out[:, :FT, :L][:, :, None, :]                # (B, FT, 1, L)


# ----------------------------------------------------------------------------
# Deterministic synthetic parameters (shapes match TCNBlock.__init__)
# ----------------------------------------------------------------------------
def make_params(key):
    ks = iter(jax.random.split(key, 64))
    params = []

    def conv_params(cin, cout):
        bound = 1.0 / jnp.sqrt(jnp.float32(cin * KT))
        w = jax.random.uniform(next(ks), (KT, cin, cout), jnp.float32, -bound, bound)
        b = jax.random.uniform(next(ks), (1, cout), jnp.float32, -bound, bound)
        return w, b

    def bn_params():
        gamma = 1.0 + 0.1 * jax.random.normal(next(ks), (1, FT), jnp.float32)
        beta = 0.1 * jax.random.normal(next(ks), (1, FT), jnp.float32)
        mean = 0.1 * jax.random.normal(next(ks), (1, FT), jnp.float32)
        var = jax.random.uniform(next(ks), (1, FT), jnp.float32, 0.5, 1.5)
        scale = gamma / jnp.sqrt(var + BN_EPS)
        shift = beta - mean * scale
        return scale, shift

    params += list(conv_params(F2, FT))
    for _ in range(3):
        params += list(conv_params(FT, FT))
    params += list(bn_params())
    for _ in range(4):
        params += list(conv_params(FT, FT))
    params += list(bn_params())
    bound = 1.0 / jnp.sqrt(jnp.float32(F2))
    wres = jax.random.uniform(next(ks), (F2, FT), jnp.float32, -bound, bound)
    bres = jax.random.uniform(next(ks), (1, FT), jnp.float32, -bound, bound)
    params += [wres, bres]
    return params


# ----------------------------------------------------------------------------
# Pure-JAX reference (same math, inference mode) for a correctness check
# ----------------------------------------------------------------------------
def tcn_block_reference(x_nchw, params):
    (w1, b1, w2, b2, w3, b3, w4, b4, bn1s, bn1t,
     w5, b5, w6, b6, w7, b7, w8, b8, bn2s, bn2t, wres, bres) = params
    x = jnp.transpose(x_nchw[:, :, 0, :], (0, 2, 1)).astype(jnp.float32)   # (B,L,C)
    hi = lax.Precision.HIGHEST

    def shift(h, s):
        if s == 0:
            return h
        return jnp.pad(h, ((0, 0), (s, 0), (0, 0)))[:, : h.shape[1], :]

    def conv(h, w, b, d):
        acc = jnp.zeros(h.shape[:2] + (w.shape[2],), jnp.float32) + b
        for k in range(KT):
            acc = acc + jnp.einsum("blc,cf->blf", shift(h, (KT - 1 - k) * d),
                                   w[k], precision=hi)
        return acc

    h = conv(x, w1, b1, 1); h = conv(h, w2, b2, 2)
    h = conv(h, w3, b3, 4); h = conv(h, w4, b4, 8)
    h = _elu(h * bn1s + bn1t)
    h = conv(h, w5, b5, 1); h = conv(h, w6, b6, 2)
    h = conv(h, w7, b7, 4); h = conv(h, w8, b8, 8)
    h = _elu(h * bn2s + bn2t)
    res = jnp.einsum("blc,cf->blf", x, wres, precision=hi) + bres
    y = h + res                                             # (B, L, FT)
    return jnp.transpose(y, (0, 2, 1))[:, :, None, :]        # (B, FT, 1, L)


if __name__ == "__main__":
    key = jax.random.PRNGKey(0)
    k_x, k_p = jax.random.split(key)

    B, L = 2, 64
    x = jax.random.normal(k_x, (B, F2, 1, L), jnp.float32)   # NCHW like PyTorch
    params = make_params(k_p)

    y = tcn_block(x, params)
    jax.block_until_ready(y)
    assert y.shape == (B, FT, 1, L), y.shape

    y_ref = tcn_block_reference(x, params)
    err = float(jnp.max(jnp.abs(y - y_ref)))
    # bf16 MXU operands (explicit) across 8 chained convs vs an f32-HIGHEST
    # reference: expected max abs error ~1e-2 at these activation magnitudes.
    if not err < 3e-2:
        raise AssertionError(f"kernel vs reference mismatch: max abs err {err}")

    print("KERNEL_OK")
</pallas_src>

<mosaic_0001>
module attributes {stable_mosaic.version = 11 : i64} {
  func.func @tcn_block_kernel(%arg0: i32, %arg1: memref<1x16x128xf32, #tpu.memory_space<vmem>>, %arg2: memref<8x16x64xbf16, #tpu.memory_space<vmem>>, %arg3: memref<11x16x1xf32, #tpu.memory_space<vmem>>, %arg4: memref<16x16xbf16, #tpu.memory_space<vmem>>, %arg5: memref<1x16x128xf32, #tpu.memory_space<vmem>>) attributes {dimension_semantics = [#tpu.dimension_semantics<parallel>], iteration_bounds = array<i64: 2>, scalar_prefetch = 0 : i64, scratch_operands = 0 : i64, tpu.core_type = #tpu.core_type<tc>, window_params = [{transform_indices = @transform_0, window_bounds = array<i64: 1, 16, 128>}, {pipeline_mode = #tpu.pipeline_mode<synchronous>, transform_indices = @transform_1, window_bounds = array<i64: 8, 16, 64>}, {pipeline_mode = #tpu.pipeline_mode<synchronous>, transform_indices = @transform_2, window_bounds = array<i64: 11, 16, 1>}, {pipeline_mode = #tpu.pipeline_mode<synchronous>, transform_indices = @transform_3, window_bounds = array<i64: 16, 16>}, {transform_indices = @transform_4, window_bounds = array<i64: 1, 16, 128>}]} {
    %c0 = arith.constant 0 : index
    %c0_0 = arith.constant 0 : index
    %c0_1 = arith.constant 0 : index
    %0 = vector.load %arg1[%c0, %c0_0, %c0_1] : memref<1x16x128xf32, #tpu.memory_space<vmem>>, vector<1x16x128xf32>
    %1 = vector.shape_cast %0 : vector<1x16x128xf32> to vector<16x128xf32>
    %2 = tpu.iota {dimensions = array<i32: 1>} : vector<16x128xi32>
    %c3_i32 = arith.constant 3 : i32
    %3 = vector.broadcast %c3_i32 : i32 to vector<16x128xi32>
    %4 = arith.cmpi slt, %2, %3 : vector<16x128xi32>
    %c3_i32_2 = arith.constant 3 : i32
    %5 = tpu.dynamic_rotate %1 by %c3_i32_2 dim 1 : vector<16x128xf32>, i32 -> vector<16x128xf32>
    %cst = arith.constant 0.000000e+00 : f32
    %6 = vector.broadcast %cst : f32 to vector<16x128xf32>
    %7 = arith.select %4, %6, %5 : vector<16x128xi1>, vector<16x128xf32>
    %c2_i32 = arith.constant 2 : i32
    %8 = vector.broadcast %c2_i32 : i32 to vector<16x128xi32>
    %9 = arith.cmpi slt, %2, %8 : vector<16x128xi32>
    %c2_i32_3 = arith.constant 2 : i32
    %10 = tpu.dynamic_rotate %1 by %c2_i32_3 dim 1 : vector<16x128xf32>, i32 -> vector<16x128xf32>
    %cst_4 = arith.constant 0.000000e+00 : f32
    %11 = vector.broadcast %cst_4 : f32 to vector<16x128xf32>
    %12 = arith.select %9, %11, %10 : vector<16x128xi1>, vector<16x128xf32>
    %c1_i32 = arith.constant 1 : i32
    %13 = vector.broadcast %c1_i32 : i32 to vector<16x128xi32>
    %14 = arith.cmpi slt, %2, %13 : vector<16x128xi32>
    %c1_i32_5 = arith.constant 1 : i32
    %15 = tpu.dynamic_rotate %1 by %c1_i32_5 dim 1 : vector<16x128xf32>, i32 -> vector<16x128xf32>
    %cst_6 = arith.constant 0.000000e+00 : f32
    %16 = vector.broadcast %cst_6 : f32 to vector<16x128xf32>
    %17 = arith.select %14, %16, %15 : vector<16x128xi1>, vector<16x128xf32>
    %18 = tpu.concatenate %7, %12, %17, %1 in 0 : vector<16x128xf32>, vector<16x128xf32>, vector<16x128xf32>, vector<16x128xf32> -> vector<64x128xf32>
    %c0_7 = arith.constant 0 : index
    %c0_8 = arith.constant 0 : index
    %c0_9 = arith.constant 0 : index
    %19 = vector.load %arg2[%c0_7, %c0_8, %c0_9] : memref<8x16x64xbf16, #tpu.memory_space<vmem>>, vector<1x16x64xbf16>
    %20 = vector.shape_cast %19 : vector<1x16x64xbf16> to vector<16x64xbf16>
    %21 = arith.truncf %18 : vector<64x128xf32> to vector<64x128xbf16>
    %cst_10 = arith.constant dense<0.000000e+00> : vector<16x128xf32>
    %22 = tpu.matmul %20, %21, %cst_10 {dimension_numbers = #tpu.dot_dimension_numbers<[1], [0], [0], [1], [0, 0, 1, 1], [], []>} : vector<16x64xbf16>, vector<64x128xbf16>, vector<16x128xf32> -> vector<16x128xf32>
    %c0_11 = arith.constant 0 : index
    %c0_12 = arith.constant 0 : index
    %c0_13 = arith.constant 0 : index
    %23 = vector.load %arg3[%c0_11, %c0_12, %c0_13] : memref<11x16x1xf32, #tpu.memory_space<vmem>>, vector<1x16x1xf32>
    %24 = vector.shape_cast %23 : vector<1x16x1xf32> to vector<16x1xf32>
    %25 = vector.broadcast %24 : vector<16x1xf32> to vector<16x128xf32>
    %26 = arith.addf %22, %25 : vector<16x128xf32>
    %c6_i32 = arith.constant 6 : i32
    %27 = vector.broadcast %c6_i32 : i32 to vector<16x128xi32>
    %28 = arith.cmpi slt, %2, %27 : vector<16x128xi32>
    %c6_i32_14 = arith.constant 6 : i32
    %29 = tpu.dynamic_rotate %26 by %c6_i32_14 dim 1 : vector<16x128xf32>, i32 -> vector<16x128xf32>
    %cst_15 = arith.constant 0.000000e+00 : f32
    %30 = vector.broadcast %cst_15 : f32 to vector<16x128xf32>
    %31 = arith.select %28, %30, %29 : vector<16x128xi1>, vector<16x128xf32>
    %c4_i32 = arith.constant 4 : i32
    %32 = vector.broadcast %c4_i32 : i32 to vector<16x128xi32>
    %33 = arith.cmpi slt, %2, %32 : vector<16x128xi32>
    %c4_i32_16 = arith.constant 4 : i32
    %34 = tpu.dynamic_rotate %26 by %c4_i32_16 dim 1 : vector<16x128xf32>, i32 -> vector<16x128xf32>
    %cst_17 = arith.constant 0.000000e+00 : f32
    %35 = vector.broadcast %cst_17 : f32 to vector<16x128xf32>
    %36 = arith.select %33, %35, %34 : vector<16x128xi1>, vector<16x128xf32>
    %c2_i32_18 = arith.constant 2 : i32
    %37 = tpu.dynamic_rotate %26 by %c2_i32_18 dim 1 : vector<16x128xf32>, i32 -> vector<16x128xf32>
    %cst_19 = arith.constant 0.000000e+00 : f32
    %38 = vector.broadcast %cst_19 : f32 to vector<16x128xf32>
    %39 = arith.select %9, %38, %37 : vector<16x128xi1>, vector<16x128xf32>
    %40 = tpu.concatenate %31, %36, %39, %26 in 0 : vector<16x128xf32>, vector<16x128xf32>, vector<16x128xf32>, vector<16x128xf32> -> vector<64x128xf32>
    %c1 = arith.constant 1 : index
    %c0_20 = arith.constant 0 : index
    %c0_21 = arith.constant 0 : index
    %41 = vector.load %arg2[%c1, %c0_20, %c0_21] : memref<8x16x64xbf16, #tpu.memory_space<vmem>>, vector<1x16x64xbf16>
    %42 = vector.shape_cast %41 : vector<1x16x64xbf16> to vector<16x64xbf16>
    %43 = arith.truncf %40 : vector<64x128xf32> to vector<64x128xbf16>
    %cst_22 = arith.constant dense<0.000000e+00> : vector<16x128xf32>
    %44 = tpu.matmul %42, %43, %cst_22 {dimension_numbers = #tpu.dot_dimension_numbers<[1], [0], [0], [1], [0, 0, 1, 1], [], []>} : vector<16x64xbf16>, vector<64x128xbf16>, vector<16x128xf32> -> vector<16x128xf32>
    %c1_23 = arith.constant 1 : index
    %c0_24 = arith.constant 0 : index
    %c0_25 = arith.constant 0 : index
    %45 = vector.load %arg3[%c1_23, %c0_24, %c0_25] : memref<11x16x1xf32, #tpu.memory_space<vmem>>, vector<1x16x1xf32>
    %46 = vector.shape_cast %45 : vector<1x16x1xf32> to vector<16x1xf32>
    %47 = vector.broadcast %46 : vector<16x1xf32> to vector<16x128xf32>
    %48 = arith.addf %44, %47 : vector<16x128xf32>
    %c12_i32 = arith.constant 12 : i32
    %49 = vector.broadcast %c12_i32 : i32 to vector<16x128xi32>
    %50 = arith.cmpi slt, %2, %49 : vector<16x128xi32>
    %c12_i32_26 = arith.constant 12 : i32
    %51 = tpu.dynamic_rotate %48 by %c12_i32_26 dim 1 : vector<16x128xf32>, i32 -> vector<16x128xf32>
    %cst_27 = arith.constant 0.000000e+00 : f32
    %52 = vector.broadcast %cst_27 : f32 to vector<16x128xf32>
    %53 = arith.select %50, %52, %51 : vector<16x128xi1>, vector<16x128xf32>
    %c8_i32 = arith.constant 8 : i32
    %54 = vector.broadcast %c8_i32 : i32 to vector<16x128xi32>
    %55 = arith.cmpi slt, %2, %54 : vector<16x128xi32>
    %c8_i32_28 = arith.constant 8 : i32
    %56 = tpu.dynamic_rotate %48 by %c8_i32_28 dim 1 : vector<16x128xf32>, i32 -> vector<16x128xf32>
    %cst_29 = arith.constant 0.000000e+00 : f32
    %57 = vector.broadcast %cst_29 : f32 to vector<16x128xf32>
    %58 = arith.select %55, %57, %56 : vector<16x128xi1>, vector<16x128xf32>
    %c4_i32_30 = arith.constant 4 : i32
    %59 = tpu.dynamic_rotate %48 by %c4_i32_30 dim 1 : vector<16x128xf32>, i32 -> vector<16x128xf32>
    %cst_31 = arith.constant 0.000000e+00 : f32
    %60 = vector.broadcast %cst_31 : f32 to vector<16x128xf32>
    %61 = arith.select %33, %60, %59 : vector<16x128xi1>, vector<16x128xf32>
    %62 = tpu.concatenate %53, %58, %61, %48 in 0 : vector<16x128xf32>, vector<16x128xf32>, vector<16x128xf32>, vector<16x128xf32> -> vector<64x128xf32>
    %c2 = arith.constant 2 : index
    %c0_32 = arith.constant 0 : index
    %c0_33 = arith.constant 0 : index
    %63 = vector.load %arg2[%c2, %c0_32, %c0_33] : memref<8x16x64xbf16, #tpu.memory_space<vmem>>, vector<1x16x64xbf16>
    %64 = vector.shape_cast %63 : vector<1x16x64xbf16> to vector<16x64xbf16>
    %65 = arith.truncf %62 : vector<64x128xf32> to vector<64x128xbf16>
    %cst_34 = arith.constant dense<0.000000e+00> : vector<16x128xf32>
    %66 = tpu.matmul %64, %65, %cst_34 {dimension_numbers = #tpu.dot_dimension_numbers<[1], [0], [0], [1], [0, 0, 1, 1], [], []>} : vector<16x64xbf16>, vector<64x128xbf16>, vector<16x128xf32> -> vector<16x128xf32>
    %c2_35 = arith.constant 2 : index
    %c0_36 = arith.constant 0 : index
    %c0_37 = arith.constant 0 : index
    %67 = vector.load %arg3[%c2_35, %c0_36, %c0_37] : memref<11x16x1xf32, #tpu.memory_space<vmem>>, vector<1x16x1xf32>
    %68 = vector.shape_cast %67 : vector<1x16x1xf32> to vector<16x1xf32>
    %69 = vector.broadcast %68 : vector<16x1xf32> to vector<16x128xf32>
    %70 = arith.addf %66, %69 : vector<16x128xf32>
    %c24_i32 = arith.constant 24 : i32
    %71 = vector.broadcast %c24_i32 : i32 to vector<16x128xi32>
    %72 = arith.cmpi slt, %2, %71 : vector<16x128xi32>
    %c24_i32_38 = arith.constant 24 : i32
    %73 = tpu.dynamic_rotate %70 by %c24_i32_38 dim 1 : vector<16x128xf32>, i32 -> vector<16x128xf32>
    %cst_39 = arith.constant 0.000000e+00 : f32
    %74 = vector.broadcast %cst_39 : f32 to vector<16x128xf32>
    %75 = arith.select %72, %74, %73 : vector<16x128xi1>, vector<16x128xf32>
    %c16_i32 = arith.constant 16 : i32
    %76 = vector.broadcast %c16_i32 : i32 to vector<16x128xi32>
    %77 = arith.cmpi slt, %2, %76 : vector<16x128xi32>
    %c16_i32_40 = arith.constant 16 : i32
    %78 = tpu.dynamic_rotate %70 by %c16_i32_40 dim 1 : vector<16x128xf32>, i32 -> vector<16x128xf32>
    %cst_41 = arith.constant 0.000000e+00 : f32
    %79 = vector.broadcast %cst_41 : f32 to vector<16x128xf32>
    %80 = arith.select %77, %79, %78 : vector<16x128xi1>, vector<16x128xf32>
    %c8_i32_42 = arith.constant 8 : i32
    %81 = tpu.dynamic_rotate %70 by %c8_i32_42 dim 1 : vector<16x128xf32>, i32 -> vector<16x128xf32>
    %cst_43 = arith.constant 0.000000e+00 : f32
    %82 = vector.broadcast %cst_43 : f32 to vector<16x128xf32>
    %83 = arith.select %55, %82, %81 : vector<16x128xi1>, vector<16x128xf32>
    %84 = tpu.concatenate %75, %80, %83, %70 in 0 : vector<16x128xf32>, vector<16x128xf32>, vector<16x128xf32>, vector<16x128xf32> -> vector<64x128xf32>
    %c3 = arith.constant 3 : index
    %c0_44 = arith.constant 0 : index
    %c0_45 = arith.constant 0 : index
    %85 = vector.load %arg2[%c3, %c0_44, %c0_45] : memref<8x16x64xbf16, #tpu.memory_space<vmem>>, vector<1x16x64xbf16>
    %86 = vector.shape_cast %85 : vector<1x16x64xbf16> to vector<16x64xbf16>
    %87 = arith.truncf %84 : vector<64x128xf32> to vector<64x128xbf16>
    %cst_46 = arith.constant dense<0.000000e+00> : vector<16x128xf32>
    %88 = tpu.matmul %86, %87, %cst_46 {dimension_numbers = #tpu.dot_dimension_numbers<[1], [0], [0], [1], [0, 0, 1, 1], [], []>} : vector<16x64xbf16>, vector<64x128xbf16>, vector<16x128xf32> -> vector<16x128xf32>
    %c6 = arith.constant 6 : index
    %c0_47 = arith.constant 0 : index
    %c0_48 = arith.constant 0 : index
    %89 = vector.load %arg3[%c6, %c0_47, %c0_48] : memref<11x16x1xf32, #tpu.memory_space<vmem>>, vector<1x16x1xf32>
    %90 = vector.shape_cast %89 : vector<1x16x1xf32> to vector<16x1xf32>
    %91 = vector.broadcast %90 : vector<16x1xf32> to vector<16x128xf32>
    %92 = arith.mulf %88, %91 : vector<16x128xf32>
    %c7 = arith.constant 7 : index
    %c0_49 = arith.constant 0 : index
    %c0_50 = arith.constant 0 : index
    %93 = vector.load %arg3[%c7, %c0_49, %c0_50] : memref<11x16x1xf32, #tpu.memory_space<vmem>>, vector<1x16x1xf32>
    %94 = vector.shape_cast %93 : vector<1x16x1xf32> to vector<16x1xf32>
    %95 = vector.broadcast %94 : vector<16x1xf32> to vector<16x128xf32>
    %96 = arith.addf %92, %95 : vector<16x128xf32>
    %cst_51 = arith.constant 0.000000e+00 : f32
    %97 = vector.broadcast %cst_51 : f32 to vector<16x128xf32>
    %98 = arith.cmpf ogt, %96, %97 : vector<16x128xf32>
    %cst_52 = arith.constant 0.000000e+00 : f32
    %99 = vector.broadcast %cst_52 : f32 to vector<16x128xf32>
    %100 = arith.minimumf %96, %99 : vector<16x128xf32>
    %101 = math.exp %100 : vector<16x128xf32>
    %cst_53 = arith.constant 1.000000e+00 : f32
    %102 = vector.broadcast %cst_53 : f32 to vector<16x128xf32>
    %103 = arith.subf %101, %102 : vector<16x128xf32>
    %104 = arith.select %98, %96, %103 : vector<16x128xi1>, vector<16x128xf32>
    %c3_i32_54 = arith.constant 3 : i32
    %105 = tpu.dynamic_rotate %104 by %c3_i32_54 dim 1 : vector<16x128xf32>, i32 -> vector<16x128xf32>
    %cst_55 = arith.constant 0.000000e+00 : f32
    %106 = vector.broadcast %cst_55 : f32 to vector<16x128xf32>
    %107 = arith.select %4, %106, %105 : vector<16x128xi1>, vector<16x128xf32>
    %c2_i32_56 = arith.constant 2 : i32
    %108 = tpu.dynamic_rotate %104 by %c2_i32_56 dim 1 : vector<16x128xf32>, i32 -> vector<16x128xf32>
    %cst_57 = arith.constant 0.000000e+00 : f32
    %109 = vector.broadcast %cst_57 : f32 to vector<16x128xf32>
    %110 = arith.select %9, %109, %108 : vector<16x128xi1>, vector<16x128xf32>
    %c1_i32_58 = arith.constant 1 : i32
    %111 = tpu.dynamic_rotate %104 by %c1_i32_58 dim 1 : vector<16x128xf32>, i32 -> vector<16x128xf32>
    %cst_59 = arith.constant 0.000000e+00 : f32
    %112 = vector.broadcast %cst_59 : f32 to vector<16x128xf32>
    %113 = arith.select %14, %112, %111 : vector<16x128xi1>, vector<16x128xf32>
    %114 = tpu.concatenate %107, %110, %113, %104 in 0 : vector<16x128xf32>, vector<16x128xf32>, vector<16x128xf32>, vector<16x128xf32> -> vector<64x128xf32>
    %c4 = arith.constant 4 : index
    %c0_60 = arith.constant 0 : index
    %c0_61 = arith.constant 0 : index
    %115 = vector.load %arg2[%c4, %c0_60, %c0_61] : memref<8x16x64xbf16, #tpu.memory_space<vmem>>, vector<1x16x64xbf16>
    %116 = vector.shape_cast %115 : vector<1x16x64xbf16> to vector<16x64xbf16>
    %117 = arith.truncf %114 : vector<64x128xf32> to vector<64x128xbf16>
    %cst_62 = arith.constant dense<0.000000e+00> : vector<16x128xf32>
    %118 = tpu.matmul %116, %117, %cst_62 {dimension_numbers = #tpu.dot_dimension_numbers<[1], [0], [0], [1], [0, 0, 1, 1], [], []>} : vector<16x64xbf16>, vector<64x128xbf16>, vector<16x128xf32> -> vector<16x128xf32>
    %c3_63 = arith.constant 3 : index
    %c0_64 = arith.constant 0 : index
    %c0_65 = arith.constant 0 : index
    %119 = vector.load %arg3[%c3_63, %c0_64, %c0_65] : memref<11x16x1xf32, #tpu.memory_space<vmem>>, vector<1x16x1xf32>
    %120 = vector.shape_cast %119 : vector<1x16x1xf32> to vector<16x1xf32>
    %121 = vector.broadcast %120 : vector<16x1xf32> to vector<16x128xf32>
    %122 = arith.addf %118, %121 : vector<16x128xf32>
    %c6_i32_66 = arith.constant 6 : i32
    %123 = tpu.dynamic_rotate %122 by %c6_i32_66 dim 1 : vector<16x128xf32>, i32 -> vector<16x128xf32>
    %cst_67 = arith.constant 0.000000e+00 : f32
    %124 = vector.broadcast %cst_67 : f32 to vector<16x128xf32>
    %125 = arith.select %28, %124, %123 : vector<16x128xi1>, vector<16x128xf32>
    %c4_i32_68 = arith.constant 4 : i32
    %126 = tpu.dynamic_rotate %122 by %c4_i32_68 dim 1 : vector<16x128xf32>, i32 -> vector<16x128xf32>
    %cst_69 = arith.constant 0.000000e+00 : f32
    %127 = vector.broadcast %cst_69 : f32 to vector<16x128xf32>
    %128 = arith.select %33, %127, %126 : vector<16x128xi1>, vector<16x128xf32>
    %c2_i32_70 = arith.constant 2 : i32
    %129 = tpu.dynamic_rotate %122 by %c2_i32_70 dim 1 : vector<16x128xf32>, i32 -> vector<16x128xf32>
    %cst_71 = arith.constant 0.000000e+00 : f32
    %130 = vector.broadcast %cst_71 : f32 to vector<16x128xf32>
    %131 = arith.select %9, %130, %129 : vector<16x128xi1>, vector<16x128xf32>
    %132 = tpu.concatenate %125, %128, %131, %122 in 0 : vector<16x128xf32>, vector<16x128xf32>, vector<16x128xf32>, vector<16x128xf32> -> vector<64x128xf32>
    %c5 = arith.constant 5 : index
    %c0_72 = arith.constant 0 : index
    %c0_73 = arith.constant 0 : index
    %133 = vector.load %arg2[%c5, %c0_72, %c0_73] : memref<8x16x64xbf16, #tpu.memory_space<vmem>>, vector<1x16x64xbf16>
    %134 = vector.shape_cast %133 : vector<1x16x64xbf16> to vector<16x64xbf16>
    %135 = arith.truncf %132 : vector<64x128xf32> to vector<64x128xbf16>
    %cst_74 = arith.constant dense<0.000000e+00> : vector<16x128xf32>
    %136 = tpu.matmul %134, %135, %cst_74 {dimension_numbers = #tpu.dot_dimension_numbers<[1], [0], [0], [1], [0, 0, 1, 1], [], []>} : vector<16x64xbf16>, vector<64x128xbf16>, vector<16x128xf32> -> vector<16x128xf32>
    %c4_75 = arith.constant 4 : index
    %c0_76 = arith.constant 0 : index
    %c0_77 = arith.constant 0 : index
    %137 = vector.load %arg3[%c4_75, %c0_76, %c0_77] : memref<11x16x1xf32, #tpu.memory_space<vmem>>, vector<1x16x1xf32>
    %138 = vector.shape_cast %137 : vector<1x16x1xf32> to vector<16x1xf32>
    %139 = vector.broadcast %138 : vector<16x1xf32> to vector<16x128xf32>
    %140 = arith.addf %136, %139 : vector<16x128xf32>
    %c12_i32_78 = arith.constant 12 : i32
    %141 = tpu.dynamic_rotate %140 by %c12_i32_78 dim 1 : vector<16x128xf32>, i32 -> vector<16x128xf32>
    %cst_79 = arith.constant 0.000000e+00 : f32
    %142 = vector.broadcast %cst_79 : f32 to vector<16x128xf32>
    %143 = arith.select %50, %142, %141 : vector<16x128xi1>, vector<16x128xf32>
    %c8_i32_80 = arith.constant 8 : i32
    %144 = tpu.dynamic_rotate %140 by %c8_i32_80 dim 1 : vector<16x128xf32>, i32 -> vector<16x128xf32>
    %cst_81 = arith.constant 0.000000e+00 : f32
    %145 = vector.broadcast %cst_81 : f32 to vector<16x128xf32>
    %146 = arith.select %55, %145, %144 : vector<16x128xi1>, vector<16x128xf32>
    %c4_i32_82 = arith.constant 4 : i32
    %147 = tpu.dynamic_rotate %140 by %c4_i32_82 dim 1 : vector<16x128xf32>, i32 -> vector<16x128xf32>
    %cst_83 = arith.constant 0.000000e+00 : f32
    %148 = vector.broadcast %cst_83 : f32 to vector<16x128xf32>
    %149 = arith.select %33, %148, %147 : vector<16x128xi1>, vector<16x128xf32>
    %150 = tpu.concatenate %143, %146, %149, %140 in 0 : vector<16x128xf32>, vector<16x128xf32>, vector<16x128xf32>, vector<16x128xf32> -> vector<64x128xf32>
    %c6_84 = arith.constant 6 : index
    %c0_85 = arith.constant 0 : index
    %c0_86 = arith.constant 0 : index
    %151 = vector.load %arg2[%c6_84, %c0_85, %c0_86] : memref<8x16x64xbf16, #tpu.memory_space<vmem>>, vector<1x16x64xbf16>
    %152 = vector.shape_cast %151 : vector<1x16x64xbf16> to vector<16x64xbf16>
    %153 = arith.truncf %150 : vector<64x128xf32> to vector<64x128xbf16>
    %cst_87 = arith.constant dense<0.000000e+00> : vector<16x128xf32>
    %154 = tpu.matmul %152, %153, %cst_87 {dimension_numbers = #tpu.dot_dimension_numbers<[1], [0], [0], [1], [0, 0, 1, 1], [], []>} : vector<16x64xbf16>, vector<64x128xbf16>, vector<16x128xf32> -> vector<16x128xf32>
    %c5_88 = arith.constant 5 : index
    %c0_89 = arith.constant 0 : index
    %c0_90 = arith.constant 0 : index
    %155 = vector.load %arg3[%c5_88, %c0_89, %c0_90] : memref<11x16x1xf32, #tpu.memory_space<vmem>>, vector<1x16x1xf32>
    %156 = vector.shape_cast %155 : vector<1x16x1xf32> to vector<16x1xf32>
    %157 = vector.broadcast %156 : vector<16x1xf32> to vector<16x128xf32>
    %158 = arith.addf %154, %157 : vector<16x128xf32>
    %c24_i32_91 = arith.constant 24 : i32
    %159 = tpu.dynamic_rotate %158 by %c24_i32_91 dim 1 : vector<16x128xf32>, i32 -> vector<16x128xf32>
    %cst_92 = arith.constant 0.000000e+00 : f32
    %160 = vector.broadcast %cst_92 : f32 to vector<16x128xf32>
    %161 = arith.select %72, %160, %159 : vector<16x128xi1>, vector<16x128xf32>
    %c16_i32_93 = arith.constant 16 : i32
    %162 = tpu.dynamic_rotate %158 by %c16_i32_93 dim 1 : vector<16x128xf32>, i32 -> vector<16x128xf32>
    %cst_94 = arith.constant 0.000000e+00 : f32
    %163 = vector.broadcast %cst_94 : f32 to vector<16x128xf32>
    %164 = arith.select %77, %163, %162 : vector<16x128xi1>, vector<16x128xf32>
    %c8_i32_95 = arith.constant 8 : i32
    %165 = tpu.dynamic_rotate %158 by %c8_i32_95 dim 1 : vector<16x128xf32>, i32 -> vector<16x128xf32>
    %cst_96 = arith.constant 0.000000e+00 : f32
    %166 = vector.broadcast %cst_96 : f32 to vector<16x128xf32>
    %167 = arith.select %55, %166, %165 : vector<16x128xi1>, vector<16x128xf32>
    %168 = tpu.concatenate %161, %164, %167, %158 in 0 : vector<16x128xf32>, vector<16x128xf32>, vector<16x128xf32>, vector<16x128xf32> -> vector<64x128xf32>
    %c7_97 = arith.constant 7 : index
    %c0_98 = arith.constant 0 : index
    %c0_99 = arith.constant 0 : index
    %169 = vector.load %arg2[%c7_97, %c0_98, %c0_99] : memref<8x16x64xbf16, #tpu.memory_space<vmem>>, vector<1x16x64xbf16>
    %170 = vector.shape_cast %169 : vector<1x16x64xbf16> to vector<16x64xbf16>
    %171 = arith.truncf %168 : vector<64x128xf32> to vector<64x128xbf16>
    %cst_100 = arith.constant dense<0.000000e+00> : vector<16x128xf32>
    %172 = tpu.matmul %170, %171, %cst_100 {dimension_numbers = #tpu.dot_dimension_numbers<[1], [0], [0], [1], [0, 0, 1, 1], [], []>} : vector<16x64xbf16>, vector<64x128xbf16>, vector<16x128xf32> -> vector<16x128xf32>
    %c8 = arith.constant 8 : index
    %c0_101 = arith.constant 0 : index
    %c0_102 = arith.constant 0 : index
    %173 = vector.load %arg3[%c8, %c0_101, %c0_102] : memref<11x16x1xf32, #tpu.memory_space<vmem>>, vector<1x16x1xf32>
    %174 = vector.shape_cast %173 : vector<1x16x1xf32> to vector<16x1xf32>
    %175 = vector.broadcast %174 : vector<16x1xf32> to vector<16x128xf32>
    %176 = arith.mulf %172, %175 : vector<16x128xf32>
    %c9 = arith.constant 9 : index
    %c0_103 = arith.constant 0 : index
    %c0_104 = arith.constant 0 : index
    %177 = vector.load %arg3[%c9, %c0_103, %c0_104] : memref<11x16x1xf32, #tpu.memory_space<vmem>>, vector<1x16x1xf32>
    %178 = vector.shape_cast %177 : vector<1x16x1xf32> to vector<16x1xf32>
    %179 = vector.broadcast %178 : vector<16x1xf32> to vector<16x128xf32>
    %180 = arith.addf %176, %179 : vector<16x128xf32>
    %cst_105 = arith.constant 0.000000e+00 : f32
    %181 = vector.broadcast %cst_105 : f32 to vector<16x128xf32>
    %182 = arith.cmpf ogt, %180, %181 : vector<16x128xf32>
    %cst_106 = arith.constant 0.000000e+00 : f32
    %183 = vector.broadcast %cst_106 : f32 to vector<16x128xf32>
    %184 = arith.minimumf %180, %183 : vector<16x128xf32>
    %185 = math.exp %184 : vector<16x128xf32>
    %cst_107 = arith.constant 1.000000e+00 : f32
    %186 = vector.broadcast %cst_107 : f32 to vector<16x128xf32>
    %187 = arith.subf %185, %186 : vector<16x128xf32>
    %188 = arith.select %182, %180, %187 : vector<16x128xi1>, vector<16x128xf32>
    %c0_108 = arith.constant 0 : index
    %c0_109 = arith.constant 0 : index
    %189 = vector.load %arg4[%c0_108, %c0_109] : memref<16x16xbf16, #tpu.memory_space<vmem>>, vector<16x16xbf16>
    %190 = arith.truncf %1 : vector<16x128xf32> to vector<16x128xbf16>
    %cst_110 = arith.constant dense<0.000000e+00> : vector<16x128xf32>
    %191 = tpu.matmul %189, %190, %cst_110 {dimension_numbers = #tpu.dot_dimension_numbers<[1], [0], [0], [1], [0, 0, 1, 1], [], []>} : vector<16x16xbf16>, vector<16x128xbf16>, vector<16x128xf32> -> vector<16x128xf32>
    %c10 = arith.constant 10 : index
    %c0_111 = arith.constant 0 : index
    %c0_112 = arith.constant 0 : index
    %192 = vector.load %arg3[%c10, %c0_111, %c0_112] : memref<11x16x1xf32, #tpu.memory_space<vmem>>, vector<1x16x1xf32>
    %193 = vector.shape_cast %192 : vector<1x16x1xf32> to vector<16x1xf32>
    %194 = vector.broadcast %193 : vector<16x1xf32> to vector<16x128xf32>
    %195 = arith.addf %191, %194 : vector<16x128xf32>
    %196 = arith.addf %188, %195 : vector<16x128xf32>
    %c0_113 = arith.constant 0 : index
    %c0_114 = arith.constant 0 : index
    %c0_115 = arith.constant 0 : index
    %197 = vector.load %arg5[%c0_113, %c0_114, %c0_115] : memref<1x16x128xf32, #tpu.memory_space<vmem>>, vector<1x16x128xf32>
    %198 = vector.shape_cast %197 : vector<1x16x128xf32> to vector<16x128xf32>
    %199 = vector.shape_cast %196 : vector<16x128xf32> to vector<1x16x128xf32>
    tpu.vector_store %arg5[%c0_113, %c0_114, %c0_115], %199 {strides = array<i32>} : memref<1x16x128xf32, #tpu.memory_space<vmem>>, vector<1x16x128xf32>,
    return
  }
  func.func @transform_0(%arg0: i32) -> (i32, i32, i32) {
    %c0_i32 = arith.constant 0 : i32
    %c0_i32_0 = arith.constant 0 : i32
    %c0_i32_1 = arith.constant 0 : i32
    return %arg0, %c0_i32, %c0_i32_0 : i32, i32, i32
  }
  func.func @transform_1(%arg0: i32) -> (i32, i32, i32) {
    %c0_i32 = arith.constant 0 : i32
    %c0_i32_0 = arith.constant 0 : i32
    %c0_i32_1 = arith.constant 0 : i32
    %c0_i32_2 = arith.constant 0 : i32
    return %c0_i32, %c0_i32_0, %c0_i32_1 : i32, i32, i32
  }
  func.func @transform_2(%arg0: i32) -> (i32, i32, i32) {
    %c0_i32 = arith.constant 0 : i32
    %c0_i32_0 = arith.constant 0 : i32
    %c0_i32_1 = arith.constant 0 : i32
    %c0_i32_2 = arith.constant 0 : i32
    return %c0_i32, %c0_i32_0, %c0_i32_1 : i32, i32, i32
  }
  func.func @transform_3(%arg0: i32) -> (i32, i32) {
    %c0_i32 = arith.constant 0 : i32
    %c0_i32_0 = arith.constant 0 : i32
    %c0_i32_1 = arith.constant 0 : i32
    return %c0_i32, %c0_i32_0 : i32, i32
  }
  func.func @transform_4(%arg0: i32) -> (i32, i32, i32) {
    %c0_i32 = arith.constant 0 : i32
    %c0_i32_0 = arith.constant 0 : i32
    %c0_i32_1 = arith.constant 0 : i32
    return %arg0, %c0_i32, %c0_i32_0 : i32, i32, i32
  }
}

</mosaic_0001>

<bundles_post_ra>
// kernel: tpu_custom_call.1
= control target key start
LH: loop header
LB: loop body
LE: loop exit
PB: predicated region body
PF: predicated region fallthrough
CT: control target
= control target key end

     0   :  { %9 = vsyncpa [#allocation3], 0  ;;  %s2121_s0 = inlined_call_operand.vmem [shape: f32[2,16,128], index: 0, kind: input, shape index: {}]   ;;  %s2122_s1 = inlined_call_operand.vmem [shape: bf16[8,16,64], index: 1, kind: input, shape index: {}]   ;;  %s2123_s2 = inlined_call_operand.vmem [shape: f32[11,16,1], index: 2, kind: input, shape index: {}]   ;;  %s2124_s3 = inlined_call_operand.vmem [shape: bf16[16,16], index: 3, kind: input, shape index: {}]   ;;  %s2125_s4 = inlined_call_operand.hbm [shape: f32[2,16,128], index: 4, kind: output, shape index: {}]  }
   0x1   :  { %11 = vsyncpa [#allocation3 + $0x1], 0  ;;  %s1743_s15 = smov 0   ;;  %s1745_s16 = smov 0  }
   0x2   :  { %s1747_s17 = smov 0   ;;  %s1749_s18 = smov 0  }
   0x3 LB: > { %s1764_s19 = sadd.s32 4294967295, %s1702_s18   ;;  %s1108_s20 = sadd.s32 4294967294, %s1702_s18   ;;  %s1702_s18 = sphi %s1749_s18, %s2149_s18   ;;  %s1698_s17 = sphi %s1747_s17, %s2148_s17   ;;  %s1694_s16 = sphi %s1745_s16, %s2147_s16   ;;  %s1690_s15 = sphi %s1743_s15, %s2146_s15  }
   0x4   : > { %s1768_s21 = sadd.s32 1, %s1702_s18   ;;  %s113_s22 = sadd.s32 1, %s1698_s17 }
   0x5   : > { %s110_s23 = ssub.s32 %s1702_s18, %s1768_s21  ;;  %p123_p0 = scmp.ne.s32.totalorder %s1698_s17, %s1694_s16 }
   0x6   : > { %p111_p1 = scmp.eq.s32.totalorder %s110_s23, 0  ;;  %p124_p2 = scmp.eq.s32.totalorder %s1764_s19, 1 }
   0x7   : > { %p129_p3 = scmp.ne.s32.totalorder %s1694_s16, %s1690_s15  ;;  %p130_p4 = scmp.eq.s32.totalorder %s1108_s20, 1 }
   0x8   : > { %s1779_s24 = scalar_select %p111_p1, %s1698_s17, %s113_s22  }
   0x9   : > { %p1781_p5 = por %p124_p2, %p123_p0  ;;  %p1785_p6 = por %p130_p4, %p129_p3 }
   0xa   : > { %p1111_p7 = scmp.ge.s32.totalorder %s1702_s18, 1  ;;  %p165_p8 = scmp.lt.s32.totalorder %s1702_s18, 3 }
   0xc   : > { %p166_p9 = pnand %p1111_p7, %p165_p8 }
   0xd   : > { %p191_p10 = scmp.lt.s32.totalorder (!%p166_p9), %s1764_s19, 1  ;;  %s1705_s6 = smov (!%p166_p9), 1  }
   0xe   : > { %169 = sbr.rel (%p166_p9) target bundleno = 2734 (0xaae), region = 36  ;;  %s1706_s7 = smov (!%p166_p9), 3  }
   0xf   : > { %s1709_s10 = smov (!%p166_p9), 2   ;;  %s1710_s20 = smov (!%p166_p9), 6  }
  0x10   : > { %s1712_s8 = smov (!%p166_p9), 8   ;;  %s1713_s12 = smov (!%p166_p9), 12  }
  0x11   : > { %s1297_s22 = sshll.u32 (!%p166_p9), %s1764_s19, 8  ;;  %s1716_s9 = smov (!%p166_p9), [#allocation2]  }
  0x12   : > { %s1646_s11 = sshll.u32 (!%p166_p9), %s1716_s9, 4  ;;  %s1647_s11 = int_to_ptr.vmem [resolvable:$false] %s1646_s11 }
  0x13   : > { %v1704_v0 = vmov 0.0   ;;  %s192_s27 = scalar_select %p191_p10, %s1764_s19, 1  ;;  %vm1707_vm0 = vmmov 0   ;;  %v228_v5 = vld [vmem:[%s2123_s2] sm:$0xff]  ;;  %v1708_v6 = vmov 0   ;;  %v229_v7 = vld [vmem:[%s2123_s2 + $0x8] sm:$0xff]  ;;  %v199_v8 = vlaneseq }
  0x14   : > { %1349 = vmatprep.subr.bf16.mxu0 %v1704_v0  ;;  %1361 = vmatprep.subr.bf16.mxu1 %v1704_v0  ;;  %v1625_v25 = vld [vmem:[%s2122_s1] sm:$0xff]   ;;  %vm245_vm7 = vcmask 523264   ;;  %v1135_v36 = vld [vmem:[%s2123_s2 + $0x18] sm:$0xff]  ;;  %v1134_v37 = vld [vmem:[%s2123_s2 + $0x10] sm:$0xff]  ;;  %s1648_s13 = scalar_lea.vmem %s1647_s11, 512 }
  0x15   : > { %s1296_s28 = sshll.u32 %s192_s27, 4  ;;  %1357 = vmatprep.mubr.msk.bf16.mxu0 %vm1707_vm0, %v1704_v0  ;;  %1369 = vmatprep.mubr.msk.bf16.mxu1 %vm1707_vm0, %v1704_v0  ;;  %v1815_v9 = vand.u32 127, %v199_v8  ;;  %s1711_s27 = smov 4   ;;  %v1626_v52 = vld [vmem:[%s2122_s1 + $0x8] sm:$0xff]   ;;  %v1155_v63 = vld [vmem:[%s2123_s2 + $0x20] sm:$0xff]  ;;  %v1243_v50 = vld [vmem:[%s2123_s2 + $0x50] sm:$0xff] }
  0x16   : > { %s195_s5 = scalar_lea.vmem %s2121_s0, %s1296_s28  ;;  %1518 = vset.pattern.permute.xlu1 %v1708_v6  ;;  %1519 = vset.pattern.permute.xlu0 %v1708_v6  ;;  %s1714_s28 = smov 16   ;;  %v1222_v24 = vld [vmem:[%s2123_s2 + $0x40] sm:$0xff] }
  0x17   : > { %v197_v1 = vld [vmem:[%s195_s5] sm:$0xff]  ;;  %v198_v2 = vld [vmem:[%s195_s5 + $0x8] sm:$0xff]  ;;  %vm1298_vm1 = vcmp.ge.s32.totalorder %v1815_v9, 1  ;;  %vm1299_vm3 = vcmp.ge.s32.totalorder %v1815_v9, 2  ;;  %vm1300_vm5 = vcmp.ge.s32.totalorder %v1815_v9, 3  ;;  %vm1301_vm8 = vcmp.ge.s32.totalorder %v1815_v9, 4 }
  0x18   : > { %v1503_v3 = vpack.i.bf16 %v198_v2, %v197_v1  ;;  %v1798_v4 = vpack.c.bf16 %v198_v2, %v197_v1  ;;  %vm1818_vm2 = vmpackc.low %vm1298_vm1, %vm1298_vm1  ;;  %vm1302_vm10 = vcmp.ge.s32.totalorder %v1815_v9, 6  ;;  %v1156_v1 = vld [vmem:[%s2123_s2 + $0x28] sm:$0xff]  ;;  %vm1303_vm12 = vcmp.ge.s32.totalorder %v1815_v9, 8  ;;  %s1715_s5 = smov 24   ;;  %v1632_v46 = vld [vmem:[%s2124_s3] sm:$0xff]  }
  0x19   : > { %vm1826_vm4 = vmpackc.low %vm1299_vm3, %vm1299_vm3  ;;  %vm1304_vm14 = vcmp.ge.s32.totalorder %v1815_v9, 12  ;;  %vm1305_vm1 = vcmp.ge.s32.totalorder %v1815_v9, 16 }
  0x1a   : > { %1504 = vrot.lane.b32.xlu0 %v1503_v3, %s1705_s6  ;;  %1514 = vrot.lane.b32.xlu1 %v1503_v3, %s1706_s7  ;;  %vm1834_vm6 = vmpackc.low %vm1300_vm5, %vm1300_vm5  ;;  %vm1306_vm5 = vcmp.ge.s32.totalorder %v1815_v9, 24 }
  0x1b   : > { %1350 = vmatpush3.bf16.msra.mxu0 %v1798_v4  ;;  %vm1861_vm9 = vmpackc.low %vm1301_vm8, %vm1301_vm8 }
  0x1c   : > { %1351 = vmatprep.subr.bf16.mxu0 %v1704_v0  ;;  %vm1869_vm11 = vmpackc.low %vm1302_vm10, %vm1302_vm10 }
  0x1d   : > { %vm1896_vm13 = vmpackc.low %vm1303_vm12, %vm1303_vm12 }
  0x1e   : > { %1509 = vrot.lane.b32.xlu0 %v1503_v3, %s1709_s10  ;;  %232 = vperm.xlu1 %1518, %v228_v5   ;;  %vm1904_vm15 = vmpackc.low %vm1304_vm14, %vm1304_vm14 }
  0x1f   : > { %vm1937_vm3 = vmpackc.low %vm1305_vm1, %vm1305_vm1 }
  0x20   : > { %vm1945_vm8 = vmpackc.low %vm1306_vm5, %vm1306_vm5 }
  0x22   : > { %237 = vperm.xlu0 %1519, %v229_v7  }
  0x8c   : > { %v1505_v10 = vpop.permute.xlu0 %1504  ;;  %v1515_v14 = vpop.permute.xlu1 %1514 }
  0x8d   : > { %v1507_v11 = vunpack.i.h.bf16 %v1505_v10  ;;  %v1506_v12 = vunpack.i.l.bf16 %v1505_v10  ;;  %v1517_v19 = vunpack.i.h.bf16 %v1515_v14  ;;  %v1516_v20 = vunpack.i.l.bf16 %v1515_v14 }
  0x8f   : > { %v1119_v15 = vpack.c.bf16 %v1507_v11, %v1506_v12  ;;  %v1129_v23 = vpack.c.bf16 %v1517_v19, %v1516_v20  ;;  %v1627_v19 = vld [vmem:[%s2122_s1 + $0x10] sm:$0xff]  }
  0x90   : > { %v1510_v16 = vpop.permute.xlu0 %1509 }
  0x91   : > { %v1512_v17 = vunpack.i.h.bf16 %v1510_v16  ;;  %v1511_v18 = vunpack.i.l.bf16 %v1510_v16  ;;  %1352 = vmatpush3.bf16.msk.msra.mxu0 %vm1818_vm2, %v1119_v15 }
  0x92   : > { %1353 = vmatprep.subr.bf16.mxu0 %v1704_v0 }
  0x93   : > { %v1124_v22 = vpack.c.bf16 %v1512_v17, %v1511_v18 }
  0x95   : > { %1354 = vmatpush3.bf16.msk.msra.mxu0 %vm1826_vm4, %v1124_v22 }
  0x96   : > { %1355 = vmatprep.subr.bf16.mxu0 %v1704_v0 }
  0x99   : > { %1356 = vmatpush3.bf16.msk.msra.mxu0 %vm1834_vm6, %v1129_v23  ;;  %v233_v27 = vpop.permute.xlu1 %232 }
  0x9a   : > { %1373 = vmatprep.subr.bf16.mxu0 %v1704_v0 }
  0x9c   : > { %1358 = vmatmul.mubr.msk.bf16.vlgmr.msra.gmra.mxu0 %vm245_vm7, %v1625_v25 }
  0x9d   : > { %1381 = vmatprep.mubr.msk.bf16.mxu0 %vm1707_vm0, %v1704_v0  ;;  %v238_v29 = vpop.permute.xlu0 %237 }
 0x15c   : > { %v283_v26 = vpop.f32.mrf.mxu0 }
 0x15d   : > { %v284_v31 = vadd.f32 %v283_v26, %v233_v27 }
 0x15e   : > { %v1359_v28 = vpop.f32.mrf.mxu0 }
 0x160   : > { %v286_v30 = vpop.f32.mrf.mxu0 }
 0x161   : > { %v287_v32 = vadd.f32 %v286_v30, %v238_v29 }
 0x162   : > { %v1360_v33 = vpop.f32.mrf.mxu0 }
 0x163   : > { %v1530_v34 = vpack.i.bf16 %v287_v32, %v284_v31  ;;  %v316_v35 = vpack.c.bf16 %v287_v32, %v284_v31  ;;  %v1193_v32 = vld [vmem:[%s2123_s2 + $0x60] sm:$0xff]  ;;  %v1195_v33 = vld [vmem:[%s2123_s2 + $0x70] sm:$0xff] }
 0x165   : > { %1531 = vrot.lane.b32.xlu0 %v1530_v34, %s1710_s20  ;;  %1521 = vrot.lane.b32.xlu1 %v1530_v34, %s1709_s10 }
 0x166   : > { %1362 = vmatpush3.bf16.msra.mxu1 %v316_v35  ;;  %v1196_v35 = vld [vmem:[%s2123_s2 + $0x78] sm:$0xff] }
 0x167   : > { %1363 = vmatprep.subr.bf16.mxu1 %v1704_v0 }
 0x169   : > { %327 = vperm.xlu0 %1519, %v1135_v36   ;;  %1526 = vrot.lane.b32.xlu1 %v1530_v34, %s1711_s27  ;;  %v1194_v34 = vld [vmem:[%s2123_s2 + $0x68] sm:$0xff] }
 0x16d   : > { %322 = vperm.xlu1 %1518, %v1134_v37  }
 0x1d7   : > { %v1522_v38 = vpop.permute.xlu1 %1521  ;;  %v1532_v42 = vpop.permute.xlu0 %1531 }
 0x1d8   : > { %v1524_v39 = vunpack.i.h.bf16 %v1522_v38  ;;  %v1523_v40 = vunpack.i.l.bf16 %v1522_v38  ;;  %v1534_v47 = vunpack.i.h.bf16 %v1532_v42  ;;  %v1533_v48 = vunpack.i.l.bf16 %v1532_v42 }
 0x1da   : > { %v1140_v41 = vpack.c.bf16 %v1524_v39, %v1523_v40  ;;  %v1150_v51 = vpack.c.bf16 %v1534_v47, %v1533_v48 }
 0x1db   : > { %v1527_v43 = vpop.permute.xlu1 %1526 }
 0x1dc   : > { %v1529_v44 = vunpack.i.h.bf16 %v1527_v43  ;;  %v1528_v45 = vunpack.i.l.bf16 %v1527_v43  ;;  %1364 = vmatpush3.bf16.msk.msra.mxu1 %vm1826_vm4, %v1140_v41 }
 0x1dd   : > { %1365 = vmatprep.subr.bf16.mxu1 %v1704_v0 }
 0x1de   : > { %v1145_v49 = vpack.c.bf16 %v1529_v44, %v1528_v45 }
 0x1e0   : > { %1366 = vmatpush3.bf16.msk.msra.mxu1 %vm1861_vm9, %v1145_v49 }
 0x1e1   : > { %1367 = vmatprep.subr.bf16.mxu1 %v1704_v0 }
 0x1e4   : > { %1368 = vmatpush3.bf16.msk.msra.mxu1 %vm1869_vm11, %v1150_v51  ;;  %v328_v55 = vpop.permute.xlu0 %327 }
 0x1e5   : > { %1385 = vmatprep.subr.bf16.mxu1 %v1704_v0 }
 0x1e7   : > { %1370 = vmatmul.mubr.msk.bf16.vlgmr.msra.gmra.mxu1 %vm245_vm7, %v1626_v52  ;;  %v1628_v52 = vld [vmem:[%s2122_s1 + $0x18] sm:$0xff]  }
 0x1e8   : > { %1393 = vmatprep.mubr.msk.bf16.mxu1 %vm1707_vm0, %v1704_v0  ;;  %v323_v56 = vpop.permute.xlu1 %322 }
 0x2a7   : > { %v372_v53 = vpop.f32.mrf.mxu1 }
 0x2a8   : > { %v373_v58 = vadd.f32 %v372_v53, %v323_v56 }
 0x2a9   : > { %v1371_v54 = vpop.f32.mrf.mxu1 }
 0x2ab   : > { %v375_v57 = vpop.f32.mrf.mxu1 }
 0x2ac   : > { %v376_v59 = vadd.f32 %v375_v57, %v328_v55 }
 0x2ad   : > { %v1372_v60 = vpop.f32.mrf.mxu1 }
 0x2ae   : > { %v1540_v61 = vpack.i.bf16 %v376_v59, %v373_v58  ;;  %v405_v62 = vpack.c.bf16 %v376_v59, %v373_v58 }
 0x2b0   : > { %1541 = vrot.lane.b32.xlu0 %v1540_v61, %s1712_s8  ;;  %1536 = vrot.lane.b32.xlu1 %v1540_v61, %s1711_s27 }
 0x2b1   : > { %1374 = vmatpush3.bf16.msra.mxu0 %v405_v62 }
 0x2b2   : > { %1375 = vmatprep.subr.bf16.mxu0 %v1704_v0 }
 0x2b4   : > { %411 = vperm.xlu0 %1519, %v1155_v63   ;;  %1546 = vrot.lane.b32.xlu1 %v1540_v61, %s1713_s12 }
 0x2b8   : > { %416 = vperm.xlu1 %1518, %v1156_v1  }
 0x322   : > { %v1542_v2 = vpop.permute.xlu0 %1541  ;;  %v1537_v3 = vpop.permute.xlu1 %1536 }
 0x323   : > { %v1539_v5 = vunpack.i.h.bf16 %v1537_v3  ;;  %v1538_v6 = vunpack.i.l.bf16 %v1537_v3  ;;  %v1544_v7 = vunpack.i.h.bf16 %v1542_v2  ;;  %v1543_v8 = vunpack.i.l.bf16 %v1542_v2 }
 0x325   : > { %v1161_v10 = vpack.c.bf16 %v1539_v5, %v1538_v6  ;;  %v1166_v14 = vpack.c.bf16 %v1544_v7, %v1543_v8 }
 0x326   : > { %v1547_v11 = vpop.permute.xlu1 %1546 }
 0x327   : > { %1376 = vmatpush3.bf16.msk.msra.mxu0 %vm1861_vm9, %v1161_v10  ;;  %v1549_v15 = vunpack.i.h.bf16 %v1547_v11  ;;  %v1548_v16 = vunpack.i.l.bf16 %v1547_v11 }
 0x328   : > { %1377 = vmatprep.subr.bf16.mxu0 %v1704_v0 }
 0x329   : > { %v1171_v18 = vpack.c.bf16 %v1549_v15, %v1548_v16 }
 0x32b   : > { %1378 = vmatpush3.bf16.msk.msra.mxu0 %vm1896_vm13, %v1166_v14 }
 0x32c   : > { %1379 = vmatprep.subr.bf16.mxu0 %v1704_v0 }
 0x32f   : > { %1380 = vmatpush3.bf16.msk.msra.mxu0 %vm1904_vm15, %v1171_v18  ;;  %v412_v23 = vpop.permute.xlu0 %411  ;;  %v1201_v18 = vld [vmem:[%s2123_s2 + $0x30] sm:$0xff] }
 0x330   : > { %1397 = vmatprep.subr.bf16.mxu0 %v1704_v0 }
 0x332   : > { %1382 = vmatmul.mubr.msk.bf16.vlgmr.msra.gmra.mxu0 %vm245_vm7, %v1627_v19  ;;  %v1202_v19 = vld [vmem:[%s2123_s2 + $0x38] sm:$0xff] }
 0x333   : > { %1405 = vmatprep.mubr.msk.bf16.mxu0 %vm1707_vm0, %v1704_v0  ;;  %v417_v25 = vpop.permute.xlu1 %416 }
 0x3f2   : > { %v461_v20 = vpop.f32.mrf.mxu0 }
 0x3f3   : > { %v462_v27 = vadd.f32 %v461_v20, %v412_v23 }
 0x3f4   : > { %v1383_v22 = vpop.f32.mrf.mxu0 }
 0x3f6   : > { %v464_v26 = vpop.f32.mrf.mxu0 }
 0x3f7   : > { %v465_v28 = vadd.f32 %v464_v26, %v417_v25 }
 0x3f8   : > { %v1384_v29 = vpop.f32.mrf.mxu0 }
 0x3f9   : > { %v1555_v30 = vpack.i.bf16 %v465_v28, %v462_v27  ;;  %v494_v31 = vpack.c.bf16 %v465_v28, %v462_v27 }
 0x3fb   : > { %1556 = vrot.lane.b32.xlu1 %v1555_v30, %s1714_s28  ;;  %1551 = vrot.lane.b32.xlu0 %v1555_v30, %s1712_s8 }
 0x3fc   : > { %1386 = vmatpush3.bf16.msra.mxu1 %v494_v31 }
 0x3fd   : > { %1387 = vmatprep.subr.bf16.mxu1 %v1704_v0 }
 0x3ff   : > { %549 = vperm.xlu1 %1518, %v1193_v32   ;;  %1561 = vrot.lane.b32.xlu0 %v1555_v30, %s1715_s5 }
 0x403   : > { %564 = vperm.xlu1 %1518, %v1195_v33   ;;  %554 = vperm.xlu0 %1519, %v1194_v34   ;;  %v1629_v34 = vld [vmem:[%s2122_s1 + $0x20] sm:$0xff]  }
 0x407   : > { %569 = vperm.xlu0 %1519, %v1196_v35  }
 0x46d   : > { %v1557_v36 = vpop.permute.xlu1 %1556  ;;  %v1552_v37 = vpop.permute.xlu0 %1551 }
 0x46e   : > { %v1554_v38 = vunpack.i.h.bf16 %v1552_v37  ;;  %v1553_v39 = vunpack.i.l.bf16 %v1552_v37  ;;  %v1559_v40 = vunpack.i.h.bf16 %v1557_v36  ;;  %v1558_v41 = vunpack.i.l.bf16 %v1557_v36 }
 0x470   : > { %v1180_v42 = vpack.c.bf16 %v1554_v38, %v1553_v39  ;;  %v1185_v45 = vpack.c.bf16 %v1559_v40, %v1558_v41 }
 0x471   : > { %v1562_v43 = vpop.permute.xlu0 %1561 }
 0x472   : > { %1388 = vmatpush3.bf16.msk.msra.mxu1 %vm1896_vm13, %v1180_v42  ;;  %v1564_v47 = vunpack.i.h.bf16 %v1562_v43  ;;  %v1563_v48 = vunpack.i.l.bf16 %v1562_v43 }
 0x473   : > { %1389 = vmatprep.subr.bf16.mxu1 %v1704_v0 }
 0x474   : > { %v1190_v51 = vpack.c.bf16 %v1564_v47, %v1563_v48 }
 0x476   : > { %1390 = vmatpush3.bf16.msk.msra.mxu1 %vm1937_vm3, %v1185_v45  ;;  %v1223_v45 = vld [vmem:[%s2123_s2 + $0x48] sm:$0xff] }
 0x477   : > { %1391 = vmatprep.subr.bf16.mxu1 %v1704_v0 }
 0x47a   : > { %1392 = vmatpush3.bf16.msk.msra.mxu1 %vm1945_vm8, %v1190_v51  ;;  %v550_v9 = vpop.permute.xlu1 %549 }
 0x47b   : > { %1409 = vmatprep.subr.bf16.mxu1 %v1704_v0 }
 0x47d   : > { %1394 = vmatmul.mubr.msk.bf16.vlgmr.msra.gmra.mxu1 %vm245_vm7, %v1628_v52 }
 0x47e   : > { %1417 = vmatprep.mubr.msk.bf16.mxu1 %vm1707_vm0, %v1704_v0  ;;  %v555_v53 = vpop.permute.xlu0 %554  ;;  %v565_v56 = vpop.permute.xlu1 %564 }
 0x482   : > { %v570_v62 = vpop.permute.xlu0 %569 }
 0x53d   : > { %v537_v54 = vpop.f32.mrf.mxu1 }
 0x53e   : > { %v557_v55 = vmul.f32 %v550_v9, %v537_v54 }
 0x53f   : > { %v1395_v57 = vpop.f32.mrf.mxu1 }
 0x540   : > { %v572_v58 = vadd.f32 %v565_v56, %v557_v55 }
 0x541   : > { %v540_v59 = vpop.f32.mrf.mxu1 }
 0x542   : > { %v576_v60 = vmin.f32 %v572_v58, 0.0  ;;  %v558_v61 = vmul.f32 %v555_v53, %v540_v59  ;;  %vm574_vm10 = vcmp.gt.f32.partialorder %v572_v58, 0.0 }
 0x543   : > { %v1396_v63 = vpop.f32.mrf.mxu1 }
 0x544   : > { %v578_v1 = vmul.f32 1.442695, %v576_v60  ;;  %v573_v2 = vadd.f32 %v570_v62, %v558_v61  ;;  %v1630_v60 = vld [vmem:[%s2122_s1 + $0x28] sm:$0xff]  }
 0x546   : > { %1634 = vpow2.f32 %v578_v1  ;;  %v577_v3 = vmin.f32 %v573_v2, 0.0  ;;  %vm575_vm12 = vcmp.gt.f32.partialorder %v573_v2, 0.0 }
 0x548   : > { %v580_v5 = vmul.f32 1.442695, %v577_v3 }
 0x54a   : > { %1636 = vpow2.f32 %v580_v5 }
 0x553   : > { %v1635_v6 = vpop.eup %1634 }
 0x554   : > { %v1197_v7 = vadd.f32 -1.0, %v1635_v6 }
 0x556   : > { %v584_v11 = vsel %vm574_vm10, %v572_v58, %v1197_v7 }
 0x557   : > { %v1637_v8 = vpop.eup %1636 }
 0x558   : > { %v1198_v10 = vadd.f32 -1.0, %v1637_v8  ;;  %v1244_v8 = vld [vmem:[%s2123_s2 + $0x58] sm:$0xff] }
 0x55a   : > { %v585_v14 = vsel %vm575_vm12, %v573_v2, %v1198_v10 }
 0x55b   : > { %v1570_v15 = vpack.i.bf16 %v585_v14, %v584_v11  ;;  %v610_v16 = vpack.c.bf16 %v585_v14, %v584_v11 }
 0x55d   : > { %1571 = vrot.lane.b32.xlu0 %v1570_v15, %s1709_s10  ;;  %1566 = vrot.lane.b32.xlu1 %v1570_v15, %s1705_s6  ;;  %s188_s6 = sand.u32 1, %s1694_s16  }
 0x55e   : > { %1398 = vmatpush3.bf16.msra.mxu0 %v610_v16  ;;  %s2080_s19 = scalar_lea.sflag [#allocation3], %s188_s6 }
 0x55f   : > { %1399 = vmatprep.subr.bf16.mxu0 %v1704_v0 }
 0x561   : > { %616 = vperm.xlu0 %1519, %v1201_v18   ;;  %1576 = vrot.lane.b32.xlu1 %v1570_v15, %s1706_s7  ;;  %s1112_s7 = sshll.u32 %s188_s6, 4 }
 0x562   : > { %s190_s23 = scalar_lea.vmem [#allocation2], %s1112_s7 }
 0x563   : > { %s1046_s29 = sshll.u32 %s190_s23, 4  ;;  %s2078_s29 = int_to_ptr.vmem [resolvable:$true] %s1046_s29 }
 0x564   : > { %p1649_p0 = scmp.lt.s32.totalorder %s2078_s29, %s1647_s11 }
 0x565   : > { %621 = vperm.xlu1 %1518, %v1202_v19  }
 0x5cf   : > { %v1572_v20 = vpop.permute.xlu0 %1571  ;;  %v1567_v22 = vpop.permute.xlu1 %1566 }
 0x5d0   : > { %v1569_v23 = vunpack.i.h.bf16 %v1567_v22  ;;  %v1568_v25 = vunpack.i.l.bf16 %v1567_v22  ;;  %v1574_v26 = vunpack.i.h.bf16 %v1572_v20  ;;  %v1573_v27 = vunpack.i.l.bf16 %v1572_v20 }
 0x5d2   : > { %v1207_v28 = vpack.c.bf16 %v1569_v23, %v1568_v25  ;;  %v1212_v30 = vpack.c.bf16 %v1574_v26, %v1573_v27  ;;  %v1631_v27 = vld [vmem:[%s2122_s1 + $0x30] sm:$0xff]  }
 0x5d3   : > { %v1577_v29 = vpop.permute.xlu1 %1576 }
 0x5d4   : > { %1400 = vmatpush3.bf16.msk.msra.mxu0 %vm1818_vm2, %v1207_v28  ;;  %v1579_v31 = vunpack.i.h.bf16 %v1577_v29  ;;  %v1578_v32 = vunpack.i.l.bf16 %v1577_v29  ;;  %vm983_vm2 = vcmask 130048  }
 0x5d5   : > { %1401 = vmatprep.subr.bf16.mxu0 %v1704_v0 }
 0x5d6   : > { %v1217_v33 = vpack.c.bf16 %v1579_v31, %v1578_v32 }
 0x5d8   : > { %1402 = vmatpush3.bf16.msk.msra.mxu0 %vm1826_vm4, %v1212_v30 }
 0x5d9   : > { %1403 = vmatprep.subr.bf16.mxu0 %v1704_v0 }
 0x5dc   : > { %1404 = vmatpush3.bf16.msk.msra.mxu0 %vm1834_vm6, %v1217_v33  ;;  %v617_v36 = vpop.permute.xlu0 %616 }
 0x5dd   : > { %1421 = vmatprep.subr.bf16.mxu0 %v1704_v0 }
 0x5df   : > { %1406 = vmatmul.mubr.msk.bf16.vlgmr.msra.gmra.mxu0 %vm245_vm7, %v1629_v34 }
 0x5e0   : > { %1429 = vmatprep.mubr.msk.bf16.mxu0 %vm1707_vm0, %v1704_v0  ;;  %v622_v37 = vpop.permute.xlu1 %621 }
 0x69f   : > { %v666_v13 = vpop.f32.mrf.mxu0 }
 0x6a0   : > { %v667_v39 = vadd.f32 %v666_v13, %v617_v36  ;;  %v1283_v36 = vld [vmem:[%s2123_s2 + $0x90] sm:$0xff] }
 0x6a1   : > { %v1407_v35 = vpop.f32.mrf.mxu0 }
 0x6a3   : > { %v669_v38 = vpop.f32.mrf.mxu0 }
 0x6a4   : > { %v670_v40 = vadd.f32 %v669_v38, %v622_v37  ;;  %v1282_v37 = vld [vmem:[%s2123_s2 + $0x88] sm:$0xff] }
 0x6a5   : > { %v1408_v41 = vpop.f32.mrf.mxu0 }
 0x6a6   : > { %v1585_v42 = vpack.i.bf16 %v670_v40, %v667_v39  ;;  %v697_v43 = vpack.c.bf16 %v670_v40, %v667_v39  ;;  %v1287_v39 = vld [vmem:[%s2123_s2 + $0xa0] sm:$0xff]  ;;  %v1284_v40 = vld [vmem:[%s2123_s2 + $0x98] sm:$0xff] }
 0x6a8   : > { %1586 = vrot.lane.b32.xlu1 %v1585_v42, %s1711_s27  ;;  %1581 = vrot.lane.b32.xlu0 %v1585_v42, %s1709_s10 }
 0x6a9   : > { %1410 = vmatpush3.bf16.msra.mxu1 %v697_v43  ;;  %v1288_v43 = vld [vmem:[%s2123_s2 + $0xa8] sm:$0xff] }
 0x6aa   : > { %1411 = vmatprep.subr.bf16.mxu1 %v1704_v0 }
 0x6ac   : > { %703 = vperm.xlu1 %1518, %v1222_v24   ;;  %1591 = vrot.lane.b32.xlu0 %v1585_v42, %s1710_s20  ;;  %s2076_s20 = scalar_lea.hbm %s2125_s4, %s1297_s22 }
 0x6b0   : > { %708 = vperm.xlu0 %1519, %v1223_v45  }
 0x71a   : > { %v1587_v47 = vpop.permute.xlu1 %1586  ;;  %v1582_v48 = vpop.permute.xlu0 %1581 }
 0x71b   : > { %v1584_v51 = vunpack.i.h.bf16 %v1582_v48  ;;  %v1583_v52 = vunpack.i.l.bf16 %v1582_v48  ;;  %v1589_v9 = vunpack.i.h.bf16 %v1587_v47  ;;  %v1588_v53 = vunpack.i.l.bf16 %v1587_v47 }
 0x71d   : > { %v1228_v54 = vpack.c.bf16 %v1584_v51, %v1583_v52  ;;  %v1233_v56 = vpack.c.bf16 %v1589_v9, %v1588_v53 }
 0x71e   : > { %v1592_v55 = vpop.permute.xlu0 %1591 }
 0x71f   : > { %1412 = vmatpush3.bf16.msk.msra.mxu1 %vm1826_vm4, %v1228_v54  ;;  %v1594_v57 = vunpack.i.h.bf16 %v1592_v55  ;;  %v1593_v58 = vunpack.i.l.bf16 %v1592_v55 }
 0x720   : > { %1413 = vmatprep.subr.bf16.mxu1 %v1704_v0 }
 0x721   : > { %v1238_v59 = vpack.c.bf16 %v1594_v57, %v1593_v58 }
 0x723   : > { %1414 = vmatpush3.bf16.msk.msra.mxu1 %vm1861_vm9, %v1233_v56 }
 0x724   : > { %1415 = vmatprep.subr.bf16.mxu1 %v1704_v0 }
 0x727   : > { %1416 = vmatpush3.bf16.msk.msra.mxu1 %vm1869_vm11, %v1238_v59  ;;  %v704_v62 = vpop.permute.xlu1 %703  ;;  %v1633_v59 = vld [vmem:[%s2122_s1 + $0x38] sm:$0xff]  }
 0x728   : > { %1433 = vmatprep.subr.bf16.mxu1 %v1704_v0 }
 0x72a   : > { %1418 = vmatmul.mubr.msk.bf16.vlgmr.msra.gmra.mxu1 %vm245_vm7, %v1630_v60 }
 0x72b   : > { %1441 = vmatprep.mubr.msk.bf16.mxu1 %vm1707_vm0, %v1704_v0  ;;  %v709_v63 = vpop.permute.xlu0 %708 }
 0x7ea   : > { %v753_v21 = vpop.f32.mrf.mxu1 }
 0x7eb   : > { %v754_v2 = vadd.f32 %v753_v21, %v704_v62 }
 0x7ec   : > { %v1419_v61 = vpop.f32.mrf.mxu1 }
 0x7ee   : > { %v756_v1 = vpop.f32.mrf.mxu1 }
 0x7ef   : > { %v757_v3 = vadd.f32 %v756_v1, %v709_v63 }
 0x7f0   : > { %v1420_v5 = vpop.f32.mrf.mxu1 }
 0x7f1   : > { %v1600_v6 = vpack.i.bf16 %v757_v3, %v754_v2  ;;  %v784_v7 = vpack.c.bf16 %v757_v3, %v754_v2 }
 0x7f3   : > { %1601 = vrot.lane.b32.xlu0 %v1600_v6, %s1712_s8  ;;  %1596 = vrot.lane.b32.xlu1 %v1600_v6, %s1711_s27 }
 0x7f4   : > { %1422 = vmatpush3.bf16.msra.mxu0 %v784_v7 }
 0x7f5   : > { %1423 = vmatprep.subr.bf16.mxu0 %v1704_v0 }
 0x7f7   : > { %790 = vperm.xlu0 %1519, %v1243_v50   ;;  %1606 = vrot.lane.b32.xlu1 %v1600_v6, %s1713_s12 }
 0x7fb   : > { %795 = vperm.xlu1 %1518, %v1244_v8  }
 0x865   : > { %v1602_v10 = vpop.permute.xlu0 %1601  ;;  %v1597_v11 = vpop.permute.xlu1 %1596 }
 0x866   : > { %v1599_v14 = vunpack.i.h.bf16 %v1597_v11  ;;  %v1598_v15 = vunpack.i.l.bf16 %v1597_v11  ;;  %v1604_v16 = vunpack.i.h.bf16 %v1602_v10  ;;  %v1603_v18 = vunpack.i.l.bf16 %v1602_v10 }
 0x868   : > { %v1249_v19 = vpack.c.bf16 %v1599_v14, %v1598_v15  ;;  %v1254_v22 = vpack.c.bf16 %v1604_v16, %v1603_v18 }
 0x869   : > { %v1607_v20 = vpop.permute.xlu1 %1606 }
 0x86a   : > { %1424 = vmatpush3.bf16.msk.msra.mxu0 %vm1861_vm9, %v1249_v19  ;;  %v1609_v23 = vunpack.i.h.bf16 %v1607_v20  ;;  %v1608_v25 = vunpack.i.l.bf16 %v1607_v20 }
 0x86b   : > { %1425 = vmatprep.subr.bf16.mxu0 %v1704_v0 }
 0x86c   : > { %v1259_v26 = vpack.c.bf16 %v1609_v23, %v1608_v25 }
 0x86e   : > { %1426 = vmatpush3.bf16.msk.msra.mxu0 %vm1896_vm13, %v1254_v22 }
 0x86f   : > { %1427 = vmatprep.subr.bf16.mxu0 %v1704_v0 }
 0x872   : > { %1428 = vmatpush3.bf16.msk.msra.mxu0 %vm1904_vm15, %v1259_v26  ;;  %v791_v30 = vpop.permute.xlu0 %790 }
 0x873   : > { %1445 = vmatprep.subr.bf16.mxu0 %v1704_v0 }
 0x875   : > { %1430 = vmatmul.mubr.msk.bf16.vlgmr.msra.gmra.mxu0 %vm245_vm7, %v1631_v27 }
 0x876   : > { %1446 = vmatpush3.bf16.msra.mxu0 %v1798_v4  ;;  %1447 = vmatprep.mubr.msk.bf16.mxu0 %vm1707_vm0, %v1704_v0  ;;  %v796_v17 = vpop.permute.xlu1 %795  ;;  %v1281_v4 = vld [vmem:[%s2123_s2 + $0x80] sm:$0xff] }
 0x87d   : > { %1448 = vmatmul.mubr.msk.bf16.vlgmr.msra.gmra.mxu0 %vm983_vm2, %v1632_v46 }
 0x935   : > { %v840_v28 = vpop.f32.mrf.mxu0 }
 0x936   : > { %v841_v32 = vadd.f32 %v840_v28, %v791_v30 }
 0x937   : > { %v1431_v29 = vpop.f32.mrf.mxu0 }
 0x939   : > { %v843_v31 = vpop.f32.mrf.mxu0 }
 0x93a   : > { %v844_v33 = vadd.f32 %v843_v31, %v796_v17 }
 0x93b   : > { %v1432_v34 = vpop.f32.mrf.mxu0 }
 0x93c   : > { %v1615_v13 = vpack.i.bf16 %v844_v33, %v841_v32  ;;  %v871_v35 = vpack.c.bf16 %v844_v33, %v841_v32 }
 0x93d   : > { %v1021_v38 = vpop.f32.mrf.mxu0 }
 0x93e   : > { %1616 = vrot.lane.b32.xlu1 %v1615_v13, %s1714_s28  ;;  %1611 = vrot.lane.b32.xlu0 %v1615_v13, %s1712_s8  ;;  %s1642_s28 = scalar_lea.vmem %s2078_s29, 256 }
 0x93f   : > { %1434 = vmatpush3.bf16.msra.mxu1 %v871_v35  ;;  %v1449_v41 = vpop.f32.mrf.mxu0  ;;  %p1643_p11 = scmp.ne.s32.totalorder %s2078_s29, %s1642_s28  ;;  %p1650_p1 = scmp.lt.s32.totalorder %s1648_s13, %s1642_s28 }
 0x940   : > { %1435 = vmatprep.subr.bf16.mxu1 %v1704_v0 }
 0x941   : > { %v1024_v42 = vpop.f32.mrf.mxu0  ;;  %p1644_p12 = pnand %p1643_p11, %p1781_p5  ;;  %p1651_p2 = por %p1650_p1, %p1649_p0 }
 0x942   : > { %926 = vperm.xlu1 %1518, %v1281_v4   ;;  %1621 = vrot.lane.b32.xlu0 %v1615_v13, %s1715_s5 }
 0x943   : > { %v1450_v24 = vpop.f32.mrf.mxu0  ;;  %p1645_p13 = pneg %p1644_p12 }
 0x945   : > { %p1652_p3 = pnand %p1651_p2, %p1645_p13 }
 0x946   : > { %941 = vperm.xlu1 %1518, %v1283_v36   ;;  %931 = vperm.xlu0 %1519, %v1282_v37  }
 0x94a   : > { %970 = vperm.xlu1 %1518, %v1287_v39   ;;  %946 = vperm.xlu0 %1519, %v1284_v40  }
 0x94e   : > { %975 = vperm.xlu0 %1519, %v1288_v43  }
 0x9b0   : > { %v1617_v45 = vpop.permute.xlu1 %1616  ;;  %v1612_v47 = vpop.permute.xlu0 %1611 }
 0x9b1   : > { %v1614_v48 = vunpack.i.h.bf16 %v1612_v47  ;;  %v1613_v51 = vunpack.i.l.bf16 %v1612_v47  ;;  %v1619_v52 = vunpack.i.h.bf16 %v1617_v45  ;;  %v1618_v9 = vunpack.i.l.bf16 %v1617_v45 }
 0x9b3   : > { %v1268_v53 = vpack.c.bf16 %v1614_v48, %v1613_v51  ;;  %v1273_v55 = vpack.c.bf16 %v1619_v52, %v1618_v9 }
 0x9b4   : > { %v1622_v54 = vpop.permute.xlu0 %1621 }
 0x9b5   : > { %1436 = vmatpush3.bf16.msk.msra.mxu1 %vm1896_vm13, %v1268_v53  ;;  %v1624_v56 = vunpack.i.h.bf16 %v1622_v54  ;;  %v1623_v57 = vunpack.i.l.bf16 %v1622_v54 }
 0x9b6   : > { %1437 = vmatprep.subr.bf16.mxu1 %v1704_v0 }
 0x9b7   : > { %v1278_v58 = vpack.c.bf16 %v1624_v56, %v1623_v57 }
 0x9b9   : > { %1438 = vmatpush3.bf16.msk.msra.mxu1 %vm1937_vm3, %v1273_v55 }
 0x9ba   : > { %1439 = vmatprep.subr.bf16.mxu1 %v1704_v0 }
 0x9bd   : > { %1440 = vmatpush3.bf16.msk.msra.mxu1 %vm1945_vm8, %v1278_v58  ;;  %v927_v12 = vpop.permute.xlu1 %926 }
 0x9c0   : > { %1442 = vmatmul.mubr.msk.bf16.vlgmr.msra.gmra.mxu1 %vm245_vm7, %v1633_v59 }
 0x9c1   : > { %v932_v60 = vpop.permute.xlu0 %931  ;;  %v942_v62 = vpop.permute.xlu1 %941 }
 0x9c5   : > { %v947_v3 = vpop.permute.xlu0 %946  ;;  %v971_v8 = vpop.permute.xlu1 %970 }
 0x9c6   : > { %v1022_v14 = vadd.f32 %v1021_v38, %v971_v8 }
 0x9c9   : > { %v976_v15 = vpop.permute.xlu0 %975 }
 0x9ca   : > { %v1025_v22 = vadd.f32 %v1024_v42, %v976_v15 }
 0xa80   : > { %v914_v21 = vpop.f32.mrf.mxu1 }
 0xa81   : > { %v934_v61 = vmul.f32 %v927_v12, %v914_v21 }
 0xa82   : > { %v1443_v44 = vpop.f32.mrf.mxu1 }
 0xa83   : > { %v949_v63 = vadd.f32 %v942_v62, %v934_v61 }
 0xa84   : > { %v917_v1 = vpop.f32.mrf.mxu1 }
 0xa85   : > { %v953_v0 = vmin.f32 %v949_v63, 0.0  ;;  %v935_v2 = vmul.f32 %v932_v60, %v917_v1  ;;  %vm951_vm0 = vcmp.gt.f32.partialorder %v949_v63, 0.0 }
 0xa86   : > { %v1444_v5 = vpop.f32.mrf.mxu1 }
 0xa87   : > { %v955_v6 = vmul.f32 1.442695, %v953_v0  ;;  %v950_v7 = vadd.f32 %v947_v3, %v935_v2 }
 0xa89   : > { %1638 = vpow2.f32 %v955_v6  ;;  %v954_v49 = vmin.f32 %v950_v7, 0.0  ;;  %vm952_vm4 = vcmp.gt.f32.partialorder %v950_v7, 0.0 }
 0xa8b   : > { %v957_v50 = vmul.f32 1.442695, %v954_v49 }
 0xa8d   : > { %1640 = vpow2.f32 %v957_v50 }
 0xa96   : > { %v1639_v10 = vpop.eup %1638 }
 0xa97   : > { %v1285_v11 = vadd.f32 -1.0, %v1639_v10 }
 0xa99   : > { %v961_v16 = vsel %vm951_vm0, %v949_v63, %v1285_v11 }
 0xa9a   : > { %v1641_v18 = vpop.eup %1640  ;;  %v1028_v19 = vadd.f32 %v1022_v14, %v961_v16 }
 0xa9b   : > { %v1286_v20 = vadd.f32 -1.0, %v1641_v18 }
 0xa9c   : > { %1030 = vst [vmem:[%s190_s23] sm:$0xff] %v1028_v19 }
 0xa9d   : > { %v962_v23 = vsel %vm952_vm4, %v950_v7, %v1286_v20 }
 0xa9e   : > { %v1029_v25 = vadd.f32 %v1025_v22, %v962_v23 }
 0xaa0   : > { %1031 = vst [vmem:[%s190_s23 + $0x8] sm:$0xff] %v1029_v25 }
 0xaa1   : > { %1655 = shalt.err (!%p1652_p3)
}
 0xaa2   : > { %s1656_s5 = scalar_lea.hbm %s2076_s20, 256  ;;  %s1660_s12 = scalar_lea.hbm %s2125_s4, 512 }
 0xaa3   : > { %p1657_p4 = scmp.ne.s32.totalorder %s2076_s20, %s1656_s5  ;;  %p1661_p9 = scmp.lt.s32.totalorder %s2076_s20, %s2125_s4 }
 0xaa4   : > { %p1662_p10 = scmp.lt.s32.totalorder %s1660_s12, %s1656_s5 }
 0xaa5   : > { %p1658_p7 = pnand %p1657_p4, %p1781_p5 }
 0xaa6   : > { %p1663_p11 = por %p1662_p10, %p1661_p9 }
 0xaa7   : > { %p1659_p8 = pneg %p1658_p7 }
 0xaa9   : > { %p1664_p12 = pnand %p1663_p11, %p1659_p8 }
 0xaab   : > { %1667 = shalt.err (!%p1664_p12)
}
 0xaac   : > { %s1717_s22 = smov 128  }
 0xaad   : > { %1451 = dma.vmem_to_hbm [thread:$0]  (%p1781_p5), %s2078_s29, 256, %s2076_s20, %s2080_s19, %s1717_s22, %s1717_s22, %s1712_s8  }
 0xaae PF: > { %p1457_p13 = scmp.ge.s32.totalorder %s1702_s18, 2  ;;  %s1061_s23 = sand.u32 1, %s1690_s15  }
 0xaaf   : > { %s1062_s30 = scalar_lea.sflag [#allocation3], %s1061_s23 }
 0xab0   : > { %p1454_p0 = pnand %p1457_p13, %p1785_p6 }
 0xab2   : > { %p1455_p1 = pneg %p1454_p0 }
 0xab4   : > { %1685 = dma.done.wait (%p1455_p1), %s1062_s30, 256  }
 0xab5   : > { %1687 = vsyncadd (%p1455_p1), %s1062_s30, 4294967040  ;;  %p14_p2 = scmp.ge.s32.totalorder %s1768_s21, 4   ;;  %s2146_s15 = smov %s1694_s16 }
 0xab6   : > { %s2147_s16 = smov %s1698_s17  ;;  %s2148_s17 = smov %s1779_s24 }
 0xab7   : > { %s2149_s18 = smov %s1768_s21  ;;  %16 = sbr.rel (!%p14_p2) target bundleno = 3 (0x3), region = 88 }
 0xabc   :  { %1067 = vsyncpa [#allocation3], 1 }
 0xabd   :  { %1069 = vsyncpa [#allocation3 + $0x1], 1 }

</bundles_post_ra>
